<compile_context>
chip_gen: v6e
topology: v6e:2x2x1
jax: 0.10.0
libtpu: 0.0.40
codegen_flags: <defaults>
</compile_context>

<pallas_src>
import math

import jax
import jax.numpy as jnp
from jax.experimental import pallas as pl
from jax.experimental.pallas import tpu as pltpu

DIM = 28
AREA = DIM * DIM          # 784
HIDDEN = 64
CATEGORIES = 10
CPAD = 128                # class dim padded to a full 128-lane vreg for compute
NEG_PAD = -1e30           # padded-class bias: exp() underflows to 0, max unaffected


def _round_up(n, m):
    return ((n + m - 1) // m) * m


def _mlp_kernel(x_ref,
                w1_ref, b1_ref,
                w2_ref, b2_ref,
                w3_ref, b3_ref,
                w4_ref, b4_ref,
                o_ref):
    """One batch tile: 4 MXU matmuls (bf16 in, f32 acc) + ReLU + log_softmax."""
    # In-kernel cast: x streams from HBM once as f32; cast rides free VPU slots.
    x = x_ref[...].astype(jnp.bfloat16)            # (TM, AREA)

    b1 = b1_ref[...]
    b2 = b2_ref[...]
    b3 = b3_ref[...]
    b4 = b4_ref[...]

    h = jnp.dot(x, w1_ref[...], preferred_element_type=jnp.float32) + b1
    h = jnp.maximum(h, 0.0).astype(jnp.bfloat16)

    h = jnp.dot(h, w2_ref[...], preferred_element_type=jnp.float32) + b2
    h = jnp.maximum(h, 0.0).astype(jnp.bfloat16)

    h = jnp.dot(h, w3_ref[...], preferred_element_type=jnp.float32) + b3
    h = jnp.maximum(h, 0.0).astype(jnp.bfloat16)

    # (TM, CPAD); padded lanes carry bias NEG_PAD -> excluded from softmax stats.
    logits = jnp.dot(h, w4_ref[...], preferred_element_type=jnp.float32) + b4

    # log_softmax over the class axis (PyTorch dim=1 == last axis here).
    m = jnp.max(logits, axis=-1, keepdims=True)
    shifted = logits - m
    lse = jnp.log(jnp.sum(jnp.exp(shifted), axis=-1, keepdims=True))
    # Store only the 10 real classes (masked vst, negligible vs HBM savings).
    o_ref[...] = (shifted - lse)[:, :CATEGORIES].astype(o_ref.dtype)


def prepare_params(params):
    """One-time weight prep (bf16 cast + layer-4 lane padding). Call once, reuse."""
    w1 = params["w1"].astype(jnp.bfloat16)
    w2 = params["w2"].astype(jnp.bfloat16)
    w3 = params["w3"].astype(jnp.bfloat16)
    w4 = jnp.pad(params["w4"], ((0, 0), (0, CPAD - CATEGORIES))).astype(jnp.bfloat16)
    b1 = params["b1"].astype(jnp.float32)
    b2 = params["b2"].astype(jnp.float32)
    b3 = params["b3"].astype(jnp.float32)
    b4 = jnp.pad(params["b4"], ((0, 0), (0, CPAD - CATEGORIES)),
                 constant_values=NEG_PAD).astype(jnp.float32)
    return (w1, b1, w2, b2, w3, b3, w4, b4)


def _pick_tile(batch, block_rows):
    """Batch tile: multiple of 8, <= block_rows, and >= 2 grid steps when possible
    so the 'parallel' batch axis spans both TensorCores on v7x."""
    tm = min(block_rows, _round_up(batch, 8))
    if tm > 8 and pl.cdiv(batch, tm) < 2:
        tm = max(8, _round_up(pl.cdiv(batch, 2), 8))
    return tm


def mlp_forward(x, prepared_weights, *, block_rows=1024):
    """x: (B, AREA) float32. prepared_weights: output of prepare_params()."""
    B = x.shape[0]
    TM = _pick_tile(B, block_rows)
    grid = (pl.cdiv(B, TM),)          # ragged last block handled by Pallas clipping

    w1, b1, w2, b2, w3, b3, w4, b4 = prepared_weights
    weight_args = (w1, b1, w2, b2, w3, b3, w4, b4)

    in_specs = [pl.BlockSpec((TM, AREA), lambda i: (i, 0))]          # streamed f32 x tiles
    in_specs += [pl.BlockSpec(a.shape, lambda i: (0, 0))             # VMEM-resident weights
                 for a in weight_args]
    out_spec = pl.BlockSpec((TM, CATEGORIES), lambda i: (i, 0))      # 10-wide output

    # VMEM budget from actual residency (weights + double-buffered x/out tiles
    # + in-flight compute), 1.5x headroom, capped 8 MiB under v7x's 64 MiB.
    bf16_b, f32_b = 2, 4
    weight_bytes = ((AREA * HIDDEN + 2 * HIDDEN * HIDDEN + HIDDEN * CPAD) * bf16_b
                    + (3 * HIDDEN + CPAD) * f32_b)
    x_stream = 2 * TM * AREA * f32_b
    out_stream = 2 * TM * CPAD * f32_b            # 10 lanes pad to 128 in VMEM
    compute_bytes = TM * (AREA * bf16_b + 2 * HIDDEN * f32_b + 3 * CPAD * f32_b)
    vmem_limit = int(min(56 * 1024 * 1024,
                         max(16 * 1024 * 1024,
                             int(1.5 * (weight_bytes + x_stream
                                        + out_stream + compute_bytes)))))

    out = pl.pallas_call(
        _mlp_kernel,
        out_shape=jax.ShapeDtypeStruct((B, CATEGORIES), jnp.float32),
        grid=grid,
        in_specs=in_specs,
        out_specs=out_spec,
        compiler_params=pltpu.CompilerParams(
            dimension_semantics=("parallel",),
            vmem_limit_bytes=vmem_limit),
    )(x, *weight_args)

    return out


def init_params(key):
    """Deterministic init mimicking nn.Linear: U(-1/sqrt(fan_in), 1/sqrt(fan_in))."""
    sizes = [(AREA, HIDDEN), (HIDDEN, HIDDEN), (HIDDEN, HIDDEN), (HIDDEN, CATEGORIES)]
    params = {}
    for idx, (fan_in, fan_out) in enumerate(sizes, start=1):
        key, kw, kb = jax.random.split(key, 3)
        bound = 1.0 / math.sqrt(fan_in)
        params[f"w{idx}"] = jax.random.uniform(
            kw, (fan_in, fan_out), jnp.float32, -bound, bound)
        params[f"b{idx}"] = jax.random.uniform(
            kb, (1, fan_out), jnp.float32, -bound, bound)
    return params


def reference_forward(x, params):
    """Pure-JAX f32 reference matching the PyTorch module semantics."""
    h = jnp.maximum(x @ params["w1"] + params["b1"], 0.0)
    h = jnp.maximum(h @ params["w2"] + params["b2"], 0.0)
    h = jnp.maximum(h @ params["w3"] + params["b3"], 0.0)
    logits = h @ params["w4"] + params["b4"]
    return jax.nn.log_softmax(logits, axis=1)


if __name__ == "__main__":
    key = jax.random.PRNGKey(0)
    key, kx = jax.random.split(key)

    batch = 8
    x = jax.random.normal(kx, (batch, AREA), dtype=jnp.float32)
    params = init_params(key)

    prepared = prepare_params(params)          # one-time weight cast/pad
    out = mlp_forward(x, prepared)
    out = jax.block_until_ready(out)

    ref = reference_forward(x, params)
    assert out.shape == (batch, CATEGORIES)
    # Tolerance relaxed vs f32 reference because matmul operands are bf16.
    assert jnp.allclose(out, ref, atol=5e-2, rtol=5e-2), "mismatch vs JAX reference"

    print("KERNEL_OK")
</pallas_src>

<mosaic_0001>
module attributes {stable_mosaic.version = 11 : i64} {
  func.func @_mlp_kernel(%arg0: i32, %arg1: memref<8x784xf32, #tpu.memory_space<vmem>>, %arg2: memref<784x64xbf16, #tpu.memory_space<vmem>>, %arg3: memref<1x64xf32, #tpu.memory_space<vmem>>, %arg4: memref<64x64xbf16, #tpu.memory_space<vmem>>, %arg5: memref<1x64xf32, #tpu.memory_space<vmem>>, %arg6: memref<64x64xbf16, #tpu.memory_space<vmem>>, %arg7: memref<1x64xf32, #tpu.memory_space<vmem>>, %arg8: memref<64x128xbf16, #tpu.memory_space<vmem>>, %arg9: memref<1x128xf32, #tpu.memory_space<vmem>>, %arg10: memref<8x10xf32, #tpu.memory_space<vmem>>) attributes {dimension_semantics = [#tpu.dimension_semantics<parallel>], iteration_bounds = array<i64: 1>, scalar_prefetch = 0 : i64, scratch_operands = 0 : i64, tpu.core_type = #tpu.core_type<tc>, window_params = [{transform_indices = @transform_0, window_bounds = array<i64: 8, 784>}, {pipeline_mode = #tpu.pipeline_mode<synchronous>, transform_indices = @transform_1, window_bounds = array<i64: 784, 64>}, {pipeline_mode = #tpu.pipeline_mode<synchronous>, transform_indices = @transform_2, window_bounds = array<i64: 1, 64>}, {pipeline_mode = #tpu.pipeline_mode<synchronous>, transform_indices = @transform_3, window_bounds = array<i64: 64, 64>}, {pipeline_mode = #tpu.pipeline_mode<synchronous>, transform_indices = @transform_4, window_bounds = array<i64: 1, 64>}, {pipeline_mode = #tpu.pipeline_mode<synchronous>, transform_indices = @transform_5, window_bounds = array<i64: 64, 64>}, {pipeline_mode = #tpu.pipeline_mode<synchronous>, transform_indices = @transform_6, window_bounds = array<i64: 1, 64>}, {pipeline_mode = #tpu.pipeline_mode<synchronous>, transform_indices = @transform_7, window_bounds = array<i64: 64, 128>}, {pipeline_mode = #tpu.pipeline_mode<synchronous>, transform_indices = @transform_8, window_bounds = array<i64: 1, 128>}, {transform_indices = @transform_9, window_bounds = array<i64: 8, 10>}]} {
    %c0 = arith.constant 0 : index
    %c0_0 = arith.constant 0 : index
    %0 = vector.load %arg1[%c0, %c0_0] : memref<8x784xf32, #tpu.memory_space<vmem>>, vector<8x784xf32>
    %1 = arith.truncf %0 : vector<8x784xf32> to vector<8x784xbf16>
    %c0_1 = arith.constant 0 : index
    %c0_2 = arith.constant 0 : index
    %2 = vector.load %arg3[%c0_1, %c0_2] : memref<1x64xf32, #tpu.memory_space<vmem>>, vector<1x64xf32>
    %c0_3 = arith.constant 0 : index
    %c0_4 = arith.constant 0 : index
    %3 = vector.load %arg5[%c0_3, %c0_4] : memref<1x64xf32, #tpu.memory_space<vmem>>, vector<1x64xf32>
    %c0_5 = arith.constant 0 : index
    %c0_6 = arith.constant 0 : index
    %4 = vector.load %arg7[%c0_5, %c0_6] : memref<1x64xf32, #tpu.memory_space<vmem>>, vector<1x64xf32>
    %c0_7 = arith.constant 0 : index
    %c0_8 = arith.constant 0 : index
    %5 = vector.load %arg9[%c0_7, %c0_8] : memref<1x128xf32, #tpu.memory_space<vmem>>, vector<1x128xf32>
    %c0_9 = arith.constant 0 : index
    %c0_10 = arith.constant 0 : index
    %6 = vector.load %arg2[%c0_9, %c0_10] : memref<784x64xbf16, #tpu.memory_space<vmem>>, vector<784x64xbf16>
    %cst = arith.constant dense<0.000000e+00> : vector<8x64xf32>
    %7 = tpu.matmul %1, %6, %cst {dimension_numbers = #tpu.dot_dimension_numbers<[1], [0], [0], [1], [0, 0, 1, 1], [], []>} : vector<8x784xbf16>, vector<784x64xbf16>, vector<8x64xf32> -> vector<8x64xf32>
    %8 = vector.broadcast %2 : vector<1x64xf32> to vector<8x64xf32>
    %9 = arith.addf %7, %8 : vector<8x64xf32>
    %cst_11 = arith.constant 0.000000e+00 : f32
    %10 = vector.broadcast %cst_11 : f32 to vector<8x64xf32>
    %11 = arith.maximumf %9, %10 : vector<8x64xf32>
    %12 = arith.truncf %11 : vector<8x64xf32> to vector<8x64xbf16>
    %c0_12 = arith.constant 0 : index
    %c0_13 = arith.constant 0 : index
    %13 = vector.load %arg4[%c0_12, %c0_13] : memref<64x64xbf16, #tpu.memory_space<vmem>>, vector<64x64xbf16>
    %cst_14 = arith.constant dense<0.000000e+00> : vector<8x64xf32>
    %14 = tpu.matmul %12, %13, %cst_14 {dimension_numbers = #tpu.dot_dimension_numbers<[1], [0], [0], [1], [0, 0, 1, 1], [], []>} : vector<8x64xbf16>, vector<64x64xbf16>, vector<8x64xf32> -> vector<8x64xf32>
    %15 = vector.broadcast %3 : vector<1x64xf32> to vector<8x64xf32>
    %16 = arith.addf %14, %15 : vector<8x64xf32>
    %cst_15 = arith.constant 0.000000e+00 : f32
    %17 = vector.broadcast %cst_15 : f32 to vector<8x64xf32>
    %18 = arith.maximumf %16, %17 : vector<8x64xf32>
    %19 = arith.truncf %18 : vector<8x64xf32> to vector<8x64xbf16>
    %c0_16 = arith.constant 0 : index
    %c0_17 = arith.constant 0 : index
    %20 = vector.load %arg6[%c0_16, %c0_17] : memref<64x64xbf16, #tpu.memory_space<vmem>>, vector<64x64xbf16>
    %cst_18 = arith.constant dense<0.000000e+00> : vector<8x64xf32>
    %21 = tpu.matmul %19, %20, %cst_18 {dimension_numbers = #tpu.dot_dimension_numbers<[1], [0], [0], [1], [0, 0, 1, 1], [], []>} : vector<8x64xbf16>, vector<64x64xbf16>, vector<8x64xf32> -> vector<8x64xf32>
    %22 = vector.broadcast %4 : vector<1x64xf32> to vector<8x64xf32>
    %23 = arith.addf %21, %22 : vector<8x64xf32>
    %cst_19 = arith.constant 0.000000e+00 : f32
    %24 = vector.broadcast %cst_19 : f32 to vector<8x64xf32>
    %25 = arith.maximumf %23, %24 : vector<8x64xf32>
    %26 = arith.truncf %25 : vector<8x64xf32> to vector<8x64xbf16>
    %c0_20 = arith.constant 0 : index
    %c0_21 = arith.constant 0 : index
    %27 = vector.load %arg8[%c0_20, %c0_21] : memref<64x128xbf16, #tpu.memory_space<vmem>>, vector<64x128xbf16>
    %cst_22 = arith.constant dense<0.000000e+00> : vector<8x128xf32>
    %28 = tpu.matmul %26, %27, %cst_22 {dimension_numbers = #tpu.dot_dimension_numbers<[1], [0], [0], [1], [0, 0, 1, 1], [], []>} : vector<8x64xbf16>, vector<64x128xbf16>, vector<8x128xf32> -> vector<8x128xf32>
    %29 = vector.broadcast %5 : vector<1x128xf32> to vector<8x128xf32>
    %30 = arith.addf %28, %29 : vector<8x128xf32>
    %cst_23 = arith.constant dense<0xFF800000> : vector<8xf32>
    %31 = vector.multi_reduction <maximumf>, %30, %cst_23 [1] : vector<8x128xf32> to vector<8xf32>
    %32 = vector.shape_cast %31 : vector<8xf32> to vector<8x1xf32>
    %33 = vector.broadcast %32 : vector<8x1xf32> to vector<8x128xf32>
    %34 = arith.subf %30, %33 : vector<8x128xf32>
    %35 = math.exp %34 : vector<8x128xf32>
    %cst_24 = arith.constant dense<0.000000e+00> : vector<8xf32>
    %36 = vector.multi_reduction <add>, %35, %cst_24 [1] : vector<8x128xf32> to vector<8xf32>
    %37 = vector.shape_cast %36 : vector<8xf32> to vector<8x1xf32>
    %38 = math.log %37 : vector<8x1xf32>
    %39 = vector.broadcast %38 : vector<8x1xf32> to vector<8x128xf32>
    %40 = arith.subf %34, %39 : vector<8x128xf32>
    %41 = vector.extract_strided_slice %40 {offsets = [0, 0], sizes = [8, 10], strides = [1, 1]} : vector<8x128xf32> to vector<8x10xf32>
    %c0_25 = arith.constant 0 : index
    %c0_26 = arith.constant 0 : index
    %42 = vector.load %arg10[%c0_25, %c0_26] : memref<8x10xf32, #tpu.memory_space<vmem>>, vector<8x10xf32>
    tpu.vector_store %arg10[%c0_25, %c0_26], %41 {strides = array<i32>} : memref<8x10xf32, #tpu.memory_space<vmem>>, vector<8x10xf32>,
    return
  }
  func.func @transform_0(%arg0: i32) -> (i32, i32) {
    %c0_i32 = arith.constant 0 : i32
    %c0_i32_0 = arith.constant 0 : i32
    return %arg0, %c0_i32 : i32, i32
  }
  func.func @transform_1(%arg0: i32) -> (i32, i32) {
    %c0_i32 = arith.constant 0 : i32
    %c0_i32_0 = arith.constant 0 : i32
    %c0_i32_1 = arith.constant 0 : i32
    return %c0_i32, %c0_i32_0 : i32, i32
  }
  func.func @transform_2(%arg0: i32) -> (i32, i32) {
    %c0_i32 = arith.constant 0 : i32
    %c0_i32_0 = arith.constant 0 : i32
    %c0_i32_1 = arith.constant 0 : i32
    return %c0_i32, %c0_i32_0 : i32, i32
  }
  func.func @transform_3(%arg0: i32) -> (i32, i32) {
    %c0_i32 = arith.constant 0 : i32
    %c0_i32_0 = arith.constant 0 : i32
    %c0_i32_1 = arith.constant 0 : i32
    return %c0_i32, %c0_i32_0 : i32, i32
  }
  func.func @transform_4(%arg0: i32) -> (i32, i32) {
    %c0_i32 = arith.constant 0 : i32
    %c0_i32_0 = arith.constant 0 : i32
    %c0_i32_1 = arith.constant 0 : i32
    return %c0_i32, %c0_i32_0 : i32, i32
  }
  func.func @transform_5(%arg0: i32) -> (i32, i32) {
    %c0_i32 = arith.constant 0 : i32
    %c0_i32_0 = arith.constant 0 : i32
    %c0_i32_1 = arith.constant 0 : i32
    return %c0_i32, %c0_i32_0 : i32, i32
  }
  func.func @transform_6(%arg0: i32) -> (i32, i32) {
    %c0_i32 = arith.constant 0 : i32
    %c0_i32_0 = arith.constant 0 : i32
    %c0_i32_1 = arith.constant 0 : i32
    return %c0_i32, %c0_i32_0 : i32, i32
  }
  func.func @transform_7(%arg0: i32) -> (i32, i32) {
    %c0_i32 = arith.constant 0 : i32
    %c0_i32_0 = arith.constant 0 : i32
    %c0_i32_1 = arith.constant 0 : i32
    return %c0_i32, %c0_i32_0 : i32, i32
  }
  func.func @transform_8(%arg0: i32) -> (i32, i32) {
    %c0_i32 = arith.constant 0 : i32
    %c0_i32_0 = arith.constant 0 : i32
    %c0_i32_1 = arith.constant 0 : i32
    return %c0_i32, %c0_i32_0 : i32, i32
  }
  func.func @transform_9(%arg0: i32) -> (i32, i32) {
    %c0_i32 = arith.constant 0 : i32
    %c0_i32_0 = arith.constant 0 : i32
    return %arg0, %c0_i32 : i32, i32
  }
}

</mosaic_0001>

<bundles_post_ra>
// kernel: tpu_custom_call.1
= control target key start
LH: loop header
LB: loop body
LE: loop exit
PB: predicated region body
PF: predicated region fallthrough
CT: control target
= control target key end

     0   :  { %v1174_v44 = vmov 0.0   ;;  %vm1175_vm0 = vmmov 0   ;;  %vm450_vm1 = vcmask 130048   ;;  %s1470_s0 = inlined_call_operand.vmem [shape: f32[8,784], index: 0, kind: input, shape index: {}]   ;;  %s1471_s1 = inlined_call_operand.vmem [shape: bf16[784,64], index: 1, kind: input, shape index: {}]   ;;  %s1472_s2 = inlined_call_operand.vmem [shape: f32[1,64], index: 2, kind: input, shape index: {}]   ;;  %s1473_s3 = inlined_call_operand.vmem [shape: bf16[64,64], index: 3, kind: input, shape index: {}]   ;;  %s1474_s4 = inlined_call_operand.vmem [shape: f32[1,64], index: 4, kind: input, shape index: {}]   ;;  %s1475_s5 = inlined_call_operand.vmem [shape: bf16[64,64], index: 5, kind: input, shape index: {}]   ;;  %s1476_s6 = inlined_call_operand.vmem [shape: f32[1,64], index: 6, kind: input, shape index: {}]   ;;  %s1477_s7 = inlined_call_operand.vmem [shape: bf16[64,128], index: 7, kind: input, shape index: {}]   ;;  %s1478_s8 = inlined_call_operand.vmem [shape: f32[1,128], index: 8, kind: input, shape index: {}]   ;;  %s1479_s9 = inlined_call_operand.hbm [shape: f32[8,10], index: 9, kind: output, shape index: {}]  }
   0x1   :  { %v1087_v0 = vld [vmem:[%s1471_s1 + $0x78] sm:$0xff]   ;;  %v1091_v4 = vld [vmem:[%s1471_s1 + $0x70] sm:$0xff]   ;;  %v1095_v8 = vld [vmem:[%s1471_s1 + $0x68] sm:$0xff]  }
   0x2   :  { %v1088_v1 = vld [vmem:[%s1471_s1 + $0x38] sm:$0xff]   ;;  %959 = vmatprep.subr.bf16.mxu0 %v1087_v0  ;;  %v1092_v5 = vld [vmem:[%s1471_s1 + $0x30] sm:$0xff]   ;;  %v1096_v9 = vld [vmem:[%s1471_s1 + $0x28] sm:$0xff]  }
   0x3   :  { %v1089_v2 = vld [vmem:[%s1471_s1 + $0xf8] sm:$0xff]   ;;  %960 = vmatpush3.bf16.msra.mxu0 %v1088_v1  ;;  %v1093_v6 = vld [vmem:[%s1471_s1 + $0xf0] sm:$0xff]   ;;  %v1097_v10 = vld [vmem:[%s1471_s1 + $0xe8] sm:$0xff]  }
   0x4   :  { %v1090_v3 = vld [vmem:[%s1471_s1 + $0xb8] sm:$0xff]   ;;  %981 = vmatprep.subr.bf16.mxu1 %v1089_v2  ;;  %961 = vmatprep.subr.bf16.mxu0 %v1091_v4  ;;  %v1094_v7 = vld [vmem:[%s1471_s1 + $0xb0] sm:$0xff]   ;;  %v1098_v11 = vld [vmem:[%s1471_s1 + $0xa8] sm:$0xff]  }
   0x5   :  { %982 = vmatpush3.bf16.msra.mxu1 %v1090_v3  ;;  %v1099_v12 = vld [vmem:[%s1471_s1 + $0x60] sm:$0xff]   ;;  %v1103_v16 = vld [vmem:[%s1471_s1 + $0x58] sm:$0xff]   ;;  %v1107_v20 = vld [vmem:[%s1471_s1 + $0x50] sm:$0xff]  }
   0x6   :  { %983 = vmatprep.subr.bf16.mxu1 %v1093_v6  ;;  %v1100_v13 = vld [vmem:[%s1471_s1 + $0x20] sm:$0xff]   ;;  %v1104_v17 = vld [vmem:[%s1471_s1 + $0x18] sm:$0xff]   ;;  %v1108_v21 = vld [vmem:[%s1471_s1 + $0x10] sm:$0xff]  }
   0x7   :  { %962 = vmatpush3.bf16.msra.mxu0 %v1092_v5  ;;  %v1101_v14 = vld [vmem:[%s1471_s1 + $0xe0] sm:$0xff]   ;;  %v1105_v18 = vld [vmem:[%s1471_s1 + $0xd8] sm:$0xff]   ;;  %v1109_v22 = vld [vmem:[%s1471_s1 + $0xd0] sm:$0xff]  }
   0x8   :  { %963 = vmatprep.subr.bf16.mxu0 %v1095_v8  ;;  %v1102_v15 = vld [vmem:[%s1471_s1 + $0xa0] sm:$0xff]   ;;  %v1106_v19 = vld [vmem:[%s1471_s1 + $0x98] sm:$0xff]   ;;  %v1110_v23 = vld [vmem:[%s1471_s1 + $0x90] sm:$0xff]  }
   0x9   :  { %984 = vmatpush3.bf16.msra.mxu1 %v1094_v7  ;;  %v1111_v24 = vld [vmem:[%s1471_s1 + $0x48] sm:$0xff]   ;;  %v1115_v28 = vld [vmem:[%s1471_s1 + $0x40] sm:$0xff]   ;;  %v1119_v36 = vld [vmem:[%s1471_s1 + $0x178] sm:$0xff]  }
   0xa   :  { %985 = vmatprep.subr.bf16.mxu1 %v1097_v10  ;;  %v1112_v25 = vld [vmem:[%s1471_s1 + $0x8] sm:$0xff]   ;;  %v1116_v29 = vld [vmem:[%s1471_s1] sm:$0xff]   ;;  %v37_v37 = vld [vmem:[%s1470_s0 + $0x18] sm:$0xff] }
   0xb   :  { %964 = vmatpush3.bf16.msra.mxu0 %v1096_v9  ;;  %v1113_v26 = vld [vmem:[%s1471_s1 + $0xc8] sm:$0xff]   ;;  %v1117_v30 = vld [vmem:[%s1471_s1 + $0xc0] sm:$0xff]   ;;  %v44_v38 = vpack.c.bf16 %v37_v37, %v37_v37  ;;  %v1120_v39 = vld [vmem:[%s1471_s1 + $0x138] sm:$0xff]  }
   0xc   :  { %965 = vmatprep.subr.bf16.mxu0 %v1099_v12  ;;  %v1114_v27 = vld [vmem:[%s1471_s1 + $0x88] sm:$0xff]   ;;  %v1118_v33 = vld [vmem:[%s1471_s1 + $0x80] sm:$0xff]   ;;  %v36_v40 = vld [vmem:[%s1470_s0 + $0x10] sm:$0xff] }
   0xd   :  { %986 = vmatpush3.bf16.msra.mxu1 %v1098_v11  ;;  %v35_v31 = vld [vmem:[%s1470_s0 + $0x8] sm:$0xff]  ;;  %v34_v34 = vld [vmem:[%s1470_s0] sm:$0xff]  ;;  %526 = vmatprep.mubr.bf16.mxu1 %v44_v38  ;;  %v43_v41 = vpack.c.bf16 %v36_v40, %v36_v40  ;;  %v1121_v42 = vld [vmem:[%s1471_s1 + $0x170] sm:$0xff]  }
   0xe   :  { %987 = vmatprep.subr.bf16.mxu1 %v1101_v14  ;;  %v42_v32 = vpack.c.bf16 %v35_v31, %v35_v31  ;;  %v41_v35 = vpack.c.bf16 %v34_v34, %v34_v34  ;;  %v1122_v43 = vld [vmem:[%s1471_s1 + $0x130] sm:$0xff]   ;;  %v1123_v45 = vld [vmem:[%s1471_s1 + $0x168] sm:$0xff]   ;;  %v1125_v47 = vld [vmem:[%s1471_s1 + $0x160] sm:$0xff]  }
   0xf   :  { %966 = vmatpush3.bf16.msra.mxu0 %v1100_v13  ;;  %v1124_v46 = vld [vmem:[%s1471_s1 + $0x128] sm:$0xff]   ;;  %v1126_v48 = vld [vmem:[%s1471_s1 + $0x120] sm:$0xff]   ;;  %v1127_v49 = vld [vmem:[%s1471_s1 + $0x158] sm:$0xff]  }
  0x10   :  { %967 = vmatprep.subr.bf16.mxu0 %v1103_v16  ;;  %486 = vmatprep.mubr.bf16.mxu0 %v42_v32  ;;  %v1128_v50 = vld [vmem:[%s1471_s1 + $0x118] sm:$0xff]   ;;  %v1129_v51 = vld [vmem:[%s1471_s1 + $0x150] sm:$0xff]   ;;  %v1135_v53 = vld [vmem:[%s1471_s1 + $0x180] sm:$0xff]  }
  0x11   :  { %988 = vmatpush3.bf16.msra.mxu1 %v1102_v15  ;;  %v1130_v52 = vld [vmem:[%s1471_s1 + $0x110] sm:$0xff]   ;;  %v39_v54 = vld [vmem:[%s1470_s0 + $0x28] sm:$0xff]  ;;  %v1133_v60 = vld [vmem:[%s1471_s1 + $0x140] sm:$0xff]  }
  0x12   :  { %989 = vmatprep.subr.bf16.mxu1 %v1105_v18  ;;  %v1131_v55 = vld [vmem:[%s1471_s1 + $0x148] sm:$0xff]   ;;  %v46_v56 = vpack.c.bf16 %v39_v54, %v39_v54  ;;  %v40_v57 = vld [vmem:[%s1470_s0 + $0x30] sm:$0xff] }
  0x13   :  { %968 = vmatpush3.bf16.msra.mxu0 %v1104_v17  ;;  %v47_v58 = vpack.c.bf16 %v40_v57, %v40_v57  ;;  %v1132_v59 = vld [vmem:[%s1471_s1 + $0x108] sm:$0xff]  }
  0x14   :  { %969 = vmatprep.subr.bf16.mxu0 %v1107_v20 }
  0x15   :  { %990 = vmatpush3.bf16.msra.mxu1 %v1106_v19 }
  0x16   :  { %991 = vmatprep.subr.bf16.mxu1 %v1109_v22 }
  0x17   :  { %970 = vmatpush3.bf16.msra.mxu0 %v1108_v21 }
  0x18   :  { %971 = vmatprep.subr.bf16.mxu0 %v1111_v24 }
  0x19   :  { %992 = vmatpush3.bf16.msra.mxu1 %v1110_v23 }
  0x1a   :  { %993 = vmatprep.subr.bf16.mxu1 %v1113_v26 }
  0x1b   :  { %972 = vmatpush3.bf16.msra.mxu0 %v1112_v25 }
  0x1c   :  { %973 = vmatprep.subr.bf16.mxu0 %v1115_v28 }
  0x1d   :  { %994 = vmatpush3.bf16.msra.mxu1 %v1114_v27 }
  0x1e   :  { %995 = vmatprep.subr.bf16.mxu1 %v1117_v30 }
  0x1f   :  { %974 = vmatpush3.bf16.msra.mxu0 %v1116_v29 }
  0x20   :  { %1003 = vmatprep.subr.bf16.mxu0 %v1119_v36 }
  0x21   :  { %996 = vmatpush3.bf16.msra.mxu1 %v1118_v33 }
  0x22   :  { %487 = vmatmul.mubr.bf16.vlgmr.msra.gmra.mxu0 %v41_v35  ;;  %1042 = vmatprep.subr.bf16.mxu1 %v1174_v44 }
  0x23   :  { %1004 = vmatpush3.bf16.msra.mxu0 %v1120_v39  ;;  %566 = vmatprep.mubr.bf16.mxu0 %v46_v56 }
  0x24   :  { %527 = vmatmul.mubr.bf16.vlgmr.msra.gmra.mxu1 %v43_v41  ;;  %1005 = vmatprep.subr.bf16.mxu0 %v1121_v42 }
  0x25   :  { %1044 = vmatprep.mubr.msk.bf16.mxu1 %vm1175_vm0, %v1174_v44  ;;  %1043 = vmatpush3.bf16.msra.mxu1 %v1135_v53 }
  0x26   :  { %1048 = vmatprep.subr.bf16.mxu1 %v1174_v44 }
  0x27   :  { %1006 = vmatpush3.bf16.msra.mxu0 %v1122_v43 }
  0x28   :  { %1007 = vmatprep.subr.bf16.mxu0 %v1123_v45 }
  0x2b   :  { %1008 = vmatpush3.bf16.msra.mxu0 %v1124_v46 }
  0x2c   :  { %1009 = vmatprep.subr.bf16.mxu0 %v1125_v47  ;;  %1045 = vmatmul.mubr.msk.bf16.vlgmr.msra.gmra.mxu1 %vm450_vm1, %v47_v58 }
  0x2d   :  { %1056 = vmatprep.mubr.msk.bf16.mxu1 %vm1175_vm0, %v1174_v44 }
  0x2f   :  { %1010 = vmatpush3.bf16.msra.mxu0 %v1126_v48 }
  0x30   :  { %1011 = vmatprep.subr.bf16.mxu0 %v1127_v49 }
  0x33   :  { %1012 = vmatpush3.bf16.msra.mxu0 %v1128_v50 }
  0x34   :  { %1013 = vmatprep.subr.bf16.mxu0 %v1129_v51 }
  0x37   :  { %1014 = vmatpush3.bf16.msra.mxu0 %v1130_v52 }
  0x38   :  { %1015 = vmatprep.subr.bf16.mxu0 %v1131_v55 }
  0x39   :  { %14 = vsyncpa [#allocation3], 0  ;;  %v1134_v61 = vld [vmem:[%s1471_s1 + $0x100] sm:$0xff]   ;;  %v1136_v0 = vld [vmem:[%s1473_s3 + $0x18] sm:$0xff]   ;;  %vm654_vm2 = vcmask 523264   ;;  %vm874_vm3 = vcmask 80896  }
  0x3a   :  { %v38_v62 = vld [vmem:[%s1470_s0 + $0x20] sm:$0xff]  ;;  %1049 = vmatpush3.bf16.msra.mxu1 %v1136_v0  ;;  %v1137_v1 = vld [vmem:[%s1473_s3 + $0x10] sm:$0xff]   ;;  %v1138_v2 = vld [vmem:[%s1473_s3 + $0x8] sm:$0xff]  }
  0x3b   :  { %1016 = vmatpush3.bf16.msra.mxu0 %v1132_v59  ;;  %v45_v63 = vpack.c.bf16 %v38_v62, %v38_v62  ;;  %1050 = vmatprep.subr.bf16.mxu1 %v1174_v44  ;;  %v1139_v3 = vld [vmem:[%s1473_s3] sm:$0xff]   ;;  %v1140_v29 = vld [vmem:[%s1475_s5 + $0x18] sm:$0xff]   ;;  %v1141_v31 = vld [vmem:[%s1475_s5 + $0x10] sm:$0xff]  }
  0x3c   :  { %1017 = vmatprep.subr.bf16.mxu0 %v1133_v60  ;;  %v890_v17 = vld [vmem:[%s1472_s2] ss:$0 sm:$0xff]  ;;  %v1142_v32 = vld [vmem:[%s1475_s5 + $0x8] sm:$0xff]   ;;  %v1144_v34 = vld [vmem:[%s1477_s7 + $0x18] sm:$0xff]  }
  0x3d   :  { %v1143_v33 = vld [vmem:[%s1475_s5] sm:$0xff]   ;;  %v1145_v35 = vld [vmem:[%s1477_s7 + $0x10] sm:$0xff]   ;;  %v1146_v45 = vld [vmem:[%s1477_s7 + $0x8] sm:$0xff]  }
  0x3e   :  { %1051 = vmatpush3.bf16.msra.mxu1 %v1137_v1  ;;  %v941_v36 = vld [vmem:[%s1474_s4] ss:$0 sm:$0xff] }
  0x3f   :  { %1018 = vmatpush3.bf16.msra.mxu0 %v1134_v61  ;;  %1052 = vmatprep.subr.bf16.mxu1 %v1174_v44  ;;  %v1147_v46 = vld [vmem:[%s1477_s7] sm:$0xff]  }
  0x40   :  { %1072 = vmatprep.subr.bf16.mxu0 %v1174_v44  ;;  %v947_v47 = vld [vmem:[%s1476_s6] ss:$0 sm:$0xff]  ;;  %s1176_s6 = smov [#allocation2]  }
  0x41   :  { %s882_s7 = sshll.u32 %s1176_s6, 4  ;;  %s883_s7 = int_to_ptr.vmem [resolvable:$true] %s882_s7 }
  0x42   :  { %567 = vmatmul.mubr.bf16.vlgmr.msra.gmra.mxu0 %v45_v63  ;;  %1053 = vmatpush3.bf16.msra.mxu1 %v1138_v2  ;;  %p1157_p1 = scmp.lt.s32.totalorder %s883_s7, %s883_s7 }
  0x43   :  { %1080 = vmatprep.mubr.msk.bf16.mxu0 %vm1175_vm0, %v1174_v44  ;;  %1054 = vmatprep.subr.bf16.mxu1 %v1174_v44 }
  0x44   :  { %1073 = vmatpush3.bf16.msra.mxu0 %v1144_v34 }
  0x45   :  { %1074 = vmatprep.subr.bf16.mxu0 %v1174_v44 }
  0x46   :  { %1055 = vmatpush3.bf16.msra.mxu1 %v1139_v3 }
  0x47   :  { %1060 = vmatprep.subr.bf16.mxu1 %v1174_v44 }
  0x48   :  { %1075 = vmatpush3.bf16.msra.mxu0 %v1145_v35 }
  0x49   :  { %1076 = vmatprep.subr.bf16.mxu0 %v1174_v44 }
  0x4c   :  { %1077 = vmatpush3.bf16.msra.mxu0 %v1146_v45 }
  0x4d   :  { %1078 = vmatprep.subr.bf16.mxu0 %v1174_v44 }
  0x50   :  { %1079 = vmatpush3.bf16.msra.mxu0 %v1147_v46 }
  0xe2   :  { %v975_v4 = vpop.f32.mrf.mxu0 }
  0xe4   :  { %v976_v5 = vpop.f32.mrf.mxu0  ;;  %v997_v6 = vpop.f32.mrf.mxu1 }
  0xe5   :  { %v977_v16 = vadd.f32 %v976_v5, %v975_v4 }
  0xe6   :  { %v978_v7 = vpop.f32.mrf.mxu0  ;;  %v998_v8 = vpop.f32.mrf.mxu1 }
  0xe7   :  { %v489_v18 = vadd.f32 %v977_v16, %v890_v17  ;;  %v999_v19 = vadd.f32 %v998_v8, %v997_v6 }
  0xe8   :  { %v979_v9 = vpop.f32.mrf.mxu0  ;;  %v1000_v10 = vpop.f32.mrf.mxu1 }
  0xe9   :  { %v529_v22 = vadd.f32 %v999_v19, %v489_v18 }
  0xea   :  { %v1001_v11 = vpop.f32.mrf.mxu1 }
  0xec   :  { %v608_v12 = vpop.f32.mrf.mxu1 }
  0xee   :  { %v1046_v13 = vpop.f32.mrf.mxu1 }
  0xf0   :  { %v611_v14 = vpop.f32.mrf.mxu1 }
  0xf2   :  { %v1047_v15 = vpop.f32.mrf.mxu1 }
 0x102   :  { %v1019_v20 = vpop.f32.mrf.mxu0 }
 0x104   :  { %v1020_v21 = vpop.f32.mrf.mxu0 }
 0x105   :  { %v1021_v23 = vadd.f32 %v1020_v21, %v1019_v20 }
 0x106   :  { %v1022_v24 = vpop.f32.mrf.mxu0 }
 0x107   :  { %v569_v25 = vadd.f32 %v1021_v23, %v529_v22 }
 0x108   :  { %v1023_v26 = vpop.f32.mrf.mxu0 }
 0x109   :  { %v609_v27 = vadd.f32 %v608_v12, %v569_v25 }
 0x10b   :  { %v614_v28 = vmax.f32 %v609_v27, 0.0 }
 0x10d   :  { %v615_v30 = vpack.c.bf16 %v614_v28, %v614_v28 }
 0x10f   :  { %1057 = vmatmul.mubr.msk.bf16.vlgmr.msra.gmra.mxu1 %vm654_vm2, %v615_v30 }
 0x110   :  { %1061 = vmatpush3.bf16.msra.mxu1 %v1140_v29  ;;  %1068 = vmatprep.mubr.msk.bf16.mxu1 %vm1175_vm0, %v1174_v44 }
 0x111   :  { %1062 = vmatprep.subr.bf16.mxu1 %v1174_v44 }
 0x114   :  { %1063 = vmatpush3.bf16.msra.mxu1 %v1141_v31 }
 0x115   :  { %1064 = vmatprep.subr.bf16.mxu1 %v1174_v44 }
 0x118   :  { %1065 = vmatpush3.bf16.msra.mxu1 %v1142_v32 }
 0x119   :  { %1066 = vmatprep.subr.bf16.mxu1 %v1174_v44  ;;  %v953_v44 = vld [vmem:[%s1478_s8] ss:$0 sm:$0xff]  ;;  %s1152_s8 = scalar_lea.vmem %s883_s7, 128 }
 0x11a   :  { %p1153_p0 = scmp.ne.s32.totalorder %s883_s7, %s1152_s8  ;;  %p1158_p2 = scmp.lt.s32.totalorder %s1152_s8, %s1152_s8 }
 0x11c   :  { %1067 = vmatpush3.bf16.msra.mxu1 %v1143_v33  ;;  %p1159_p3 = por %p1158_p2, %p1157_p1 }
 0x11e   :  { %p1160_p4 = pnand %p1159_p3, %p1153_p0 }
 0x1cf   :  { %v692_v37 = vpop.f32.mrf.mxu1 }
 0x1d0   :  { %v693_v38 = vadd.f32 %v941_v36, %v692_v37 }
 0x1d1   :  { %v1058_v39 = vpop.f32.mrf.mxu1 }
 0x1d2   :  { %v698_v40 = vmax.f32 %v693_v38, 0.0 }
 0x1d3   :  { %v695_v41 = vpop.f32.mrf.mxu1 }
 0x1d4   :  { %v699_v42 = vpack.c.bf16 %v698_v40, %v698_v40 }
 0x1d5   :  { %v1059_v43 = vpop.f32.mrf.mxu1 }
 0x1d6   :  { %1069 = vmatmul.mubr.msk.bf16.vlgmr.msra.gmra.mxu1 %vm654_vm2, %v699_v42 }
 0x296   :  { %v775_v48 = vpop.f32.mrf.mxu1 }
 0x297   :  { %v776_v49 = vadd.f32 %v947_v47, %v775_v48 }
 0x298   :  { %v1070_v50 = vpop.f32.mrf.mxu1 }
 0x299   :  { %v781_v51 = vmax.f32 %v776_v49, 0.0 }
 0x29a   :  { %v778_v52 = vpop.f32.mrf.mxu1 }
 0x29b   :  { %v782_v53 = vpack.c.bf16 %v781_v51, %v781_v51 }
 0x29c   :  { %v1071_v54 = vpop.f32.mrf.mxu1 }
 0x29d   :  { %1081 = vmatmul.mubr.msk.bf16.vlgmr.msra.gmra.mxu0 %vm654_vm2, %v782_v53 }
 0x35d   :  { %v858_v55 = vpop.f32.mrf.mxu0 }
 0x35e   :  { %v859_v56 = vadd.f32 %v953_v44, %v858_v55 }
 0x35f   :  { %v1082_v57 = vpop.f32.mrf.mxu0 }
 0x360   :  { %864 = vmax.xlane.f32.xlu0 %v859_v56 }
 0x361   :  { %v861_v58 = vpop.f32.mrf.mxu0 }
 0x363   :  { %v1083_v59 = vpop.f32.mrf.mxu0 }
 0x3e9   :  { %v865_v60 = vpop.xlane.xlu0 %864 }
 0x3ea   :  { %v866_v61 = vsub.f32 %v859_v56, %v865_v60 }
 0x3ec   :  { %v867_v62 = vmul.f32 1.442695, %v866_v61 }
 0x3ee   :  { %1148 = vpow2.f32 %v867_v62 }
 0x3fb   :  { %v1149_v63 = vpop.eup %1148 }
 0x3fc   :  { %869 = vadd.xlane.f32.xlu0 %v1149_v63 }
 0x485   :  { %v870_v0 = vpop.xlane.xlu0 %869 }
 0x486   :  { %1150 = vlog2.f32 %v870_v0 }
 0x493   :  { %v1151_v1 = vpop.eup %1150 }
 0x494   :  { %v872_v2 = vmul.f32 0.6931472, %v1151_v1 }
 0x496   :  { %v873_v3 = vsub.f32 %v866_v61, %v872_v2 }
 0x498   :  { %875 = vst.msk [vmem:[#allocation2] sm:$0xff] %vm874_vm3, %v873_v3 }
 0x499   :  { %1163 = shalt.err (!%p1160_p4)
}
 0x49a   :  { %885 = dma.vmem_to_hbm [thread:$0]  %s883_s7, 128, %s1479_s9, [#allocation3]  }
 0x49b   :  { %1172 = dma.done.wait [#allocation3], 128  }
 0x49c   :  { %1173 = vsyncadd [#allocation3], 4294967168 }
 0x49d   :  { %889 = vsyncpa [#allocation3], 1 }

</bundles_post_ra>
